<compile_context>
chip_gen: v5e
topology: v5e:2x2
jax: 0.10.0
libtpu: 0.0.40
codegen_flags: <defaults>
</compile_context>

<pallas_src>
import functools
import math

import jax
import jax.numpy as jnp
from jax.experimental import pallas as pl
from jax.experimental.pallas import tpu as pltpu


def _log_softmax(logits):
    m = jnp.max(logits, axis=-1, keepdims=True)
    z = logits - m
    lse = jnp.log(jnp.sum(jnp.exp(z), axis=-1, keepdims=True))
    return z - lse


def _chain_matmul(adj, feats, w, mm_dtype):
    """(adj @ feats) @ w, reassociated as adj @ (feats @ w) when that is cheaper.

    Static-shape decision:
        (A@F)@W : N*N*K + N*K*M flops
        A@(F@W) : N*K*M + N*N*M flops
    so put the smaller of (K, M) on the N*N contraction. Operands are cast to
    mm_dtype (bf16 fast MXU path); accumulation stays f32.
    """
    k = feats.shape[-1]
    m = w.shape[-1]
    if m < k:
        fw = jnp.dot(feats.astype(mm_dtype), w.astype(mm_dtype),
                     preferred_element_type=jnp.float32)
        return jnp.dot(adj.astype(mm_dtype), fw.astype(mm_dtype),
                       preferred_element_type=jnp.float32)
    af = jnp.dot(adj.astype(mm_dtype), feats.astype(mm_dtype),
                 preferred_element_type=jnp.float32)
    return jnp.dot(af.astype(mm_dtype), w.astype(mm_dtype),
                   preferred_element_type=jnp.float32)


def _gcn_kernel(adj_ref, x_ref, w1_ref, w2_ref, out_ref, *, mm_dtype):
    # One graph per grid step; all operands resident in VMEM.
    adj = adj_ref[...]
    # layer1 + ReLU (elementwise math kept f32: v5e VPU/EUP have no bf16).
    h = jnp.maximum(_chain_matmul(adj, x_ref[...], w1_ref[...], mm_dtype), 0.0)
    # dropout(p=0.0) in eval mode is the identity.
    # layer2 (reassociated: output_size < hidden_size).
    logits = _chain_matmul(adj, h, w2_ref[...], mm_dtype)
    # Note: output last dim << 128 lanes => masked vst; at these sizes the kernel
    # is launch/overhead-bound, not store-bound, so we accept it.
    out_ref[...] = _log_softmax(logits).astype(out_ref.dtype)


def _gcn_kernel_identity(adj_ref, w1_ref, w2_ref, out_ref, *, mm_dtype):
    # GraphConv(adj, inp=None): AX == A, so layer 1 is simply adj @ w1
    # (no identity-matrix materialization, no extra matmul).
    adj = adj_ref[...]
    h = jnp.maximum(
        jnp.dot(adj.astype(mm_dtype), w1_ref[...].astype(mm_dtype),
                preferred_element_type=jnp.float32),
        0.0)
    logits = _chain_matmul(adj, h, w2_ref[...], mm_dtype)
    out_ref[...] = _log_softmax(logits).astype(out_ref.dtype)


def gcn_forward(adj, inp, w1, w2, *, matmul_dtype=jnp.bfloat16):
    """Fused GCN forward pass (eval mode) in a single Pallas call.

    adj: (B, N, N) or (N, N) float
    inp: (B, N, input_size) / (N, input_size), or None (GraphConv identity path,
         requires input_size == N)
    w1 : (input_size, hidden_size)
    w2 : (hidden_size, output_size)
    returns log-probabilities, shape (B, N, output_size) (or (N, output_size)).
    """
    adj = jnp.asarray(adj)
    w1 = jnp.asarray(w1)
    w2 = jnp.asarray(w2)
    squeeze_batch = adj.ndim == 2
    if squeeze_batch:
        adj = adj[None]
        if inp is not None:
            inp = jnp.asarray(inp)[None]
    b, n, _ = adj.shape
    in_size, hid = w1.shape
    out_size = w2.shape[1]

    # bf16 at the call boundary: halves DMA traffic and hits the MXU's native
    # bf16 path on v6e/v7x. Accumulation is forced back to f32 in-kernel.
    adj_c = adj.astype(matmul_dtype)
    w1_c = w1.astype(matmul_dtype)
    w2_c = w2.astype(matmul_dtype)

    itemsize = jnp.dtype(matmul_dtype).itemsize
    adj_spec = pl.BlockSpec((None, n, n), lambda bb: (bb, 0, 0))
    w_specs = [
        pl.BlockSpec((in_size, hid), lambda bb: (0, 0)),
        pl.BlockSpec((hid, out_size), lambda bb: (0, 0)),
    ]
    out_spec = pl.BlockSpec((None, n, out_size), lambda bb: (bb, 0, 0))

    if inp is None:
        if in_size != n:
            raise ValueError(
                "GraphConv(inp=None) requires input_size == num_vertices "
                f"(got input_size={in_size}, num_vertices={n}).")
        kernel = functools.partial(_gcn_kernel_identity, mm_dtype=matmul_dtype)
        in_specs = [adj_spec] + w_specs
        args = (adj_c, w1_c, w2_c)
        flops1 = 2 * n * in_size * hid
        x_bytes = 0
    else:
        inp_c = jnp.asarray(inp).astype(matmul_dtype)
        kernel = functools.partial(_gcn_kernel, mm_dtype=matmul_dtype)
        in_specs = [adj_spec,
                    pl.BlockSpec((None, n, in_size), lambda bb: (bb, 0, 0))] + w_specs
        args = (adj_c, inp_c, w1_c, w2_c)
        flops1 = 2 * min(n * n * in_size + n * in_size * hid,
                         n * in_size * hid + n * n * hid)
        x_bytes = b * n * in_size * itemsize
    flops2 = 2 * min(n * n * hid + n * hid * out_size,
                     n * hid * out_size + n * n * out_size)
    cost = pl.CostEstimate(
        flops=b * (flops1 + flops2),
        transcendentals=b * n * (out_size + 1),        # exp per class + log per row
        bytes_accessed=(b * n * n * itemsize + x_bytes
                        + (in_size * hid + hid * out_size) * itemsize
                        + b * n * out_size * 4),
    )

    out = pl.pallas_call(
        kernel,
        out_shape=jax.ShapeDtypeStruct((b, n, out_size), jnp.float32),
        grid=(b,),
        in_specs=in_specs,
        out_specs=out_spec,
        compiler_params=pltpu.CompilerParams(
            dimension_semantics=("parallel",)),        # shards batch across TCs on v7x
        cost_estimate=cost,
    )(*args)
    return out[0] if squeeze_batch else out


def _ref_forward(adj, x, w1, w2, mm_dtype=jnp.bfloat16):
    """Pure-JAX reference mirroring the kernel's math / dtype handling exactly."""
    if x is None:
        h = jnp.maximum(
            jnp.dot(adj.astype(mm_dtype), w1.astype(mm_dtype),
                    preferred_element_type=jnp.float32), 0.0)
    else:
        h = jnp.maximum(_chain_matmul(adj, x, w1, mm_dtype), 0.0)
    logits = _chain_matmul(adj, h, w2, mm_dtype)
    return jax.nn.log_softmax(logits, axis=-1)


def kaiming_uniform(key, shape, a=math.sqrt(5)):
    # Replicates torch.nn.init.kaiming_uniform_(tensor, a=sqrt(5)) for a 2-D tensor.
    fan_in = shape[1]
    gain = math.sqrt(2.0 / (1.0 + a * a))
    bound = gain * math.sqrt(3.0 / fan_in)
    return jax.random.uniform(key, shape, jnp.float32, -bound, bound)


if __name__ == "__main__":
    key = jax.random.PRNGKey(0)
    k_adj, k_x, k_w1, k_w2, k_w1b = jax.random.split(key, 5)

    batch = 8            # graphs per pallas_call (grid axis, "parallel")
    num_vertices = 16
    input_size = 32
    hidden_size = 64
    output_size = 8

    # Deterministic symmetric adjacencies + node features.
    a = jax.random.uniform(k_adj, (batch, num_vertices, num_vertices), jnp.float32)
    adj = (a + jnp.swapaxes(a, -1, -2)) * 0.5
    x = jax.random.normal(k_x, (batch, num_vertices, input_size), jnp.float32)

    w1 = kaiming_uniform(k_w1, (input_size, hidden_size))
    w2 = kaiming_uniform(k_w2, (hidden_size, output_size))

    out = gcn_forward(adj, x, w1, w2)
    jax.block_until_ready(out)
    assert out.shape == (batch, num_vertices, output_size)

    ref = jax.vmap(lambda A, X: _ref_forward(A, X, w1, w2))(adj, x)
    assert jnp.allclose(out, ref, atol=1e-3, rtol=1e-3), \
        float(jnp.max(jnp.abs(out - ref)))

    # Identity path (inp=None): GraphConv uses AX == A; needs input_size == N.
    w1_id = kaiming_uniform(k_w1b, (num_vertices, hidden_size))
    out_id = gcn_forward(adj, None, w1_id, w2)
    jax.block_until_ready(out_id)
    ref_id = jax.vmap(lambda A: _ref_forward(A, None, w1_id, w2))(adj)
    assert jnp.allclose(out_id, ref_id, atol=1e-3, rtol=1e-3), \
        float(jnp.max(jnp.abs(out_id - ref_id)))

    print("KERNEL_OK")
</pallas_src>

<mosaic_0001>
module attributes {stable_mosaic.version = 11 : i64} {
  func.func @_gcn_kernel(%arg0: i32, %arg1: memref<1x16x16xbf16, #tpu.memory_space<vmem>>, %arg2: memref<1x16x32xbf16, #tpu.memory_space<vmem>>, %arg3: memref<32x64xbf16, #tpu.memory_space<vmem>>, %arg4: memref<64x8xbf16, #tpu.memory_space<vmem>>, %arg5: memref<1x16x8xf32, #tpu.memory_space<vmem>>) attributes {dimension_semantics = [#tpu.dimension_semantics<parallel>], iteration_bounds = array<i64: 8>, scalar_prefetch = 0 : i64, scratch_operands = 0 : i64, tpu.core_type = #tpu.core_type<tc>, window_params = [{transform_indices = @transform_0, window_bounds = array<i64: 1, 16, 16>}, {transform_indices = @transform_1, window_bounds = array<i64: 1, 16, 32>}, {pipeline_mode = #tpu.pipeline_mode<synchronous>, transform_indices = @transform_2, window_bounds = array<i64: 32, 64>}, {pipeline_mode = #tpu.pipeline_mode<synchronous>, transform_indices = @transform_3, window_bounds = array<i64: 64, 8>}, {transform_indices = @transform_4, window_bounds = array<i64: 1, 16, 8>}]} {
    %c0 = arith.constant 0 : index
    %c0_0 = arith.constant 0 : index
    %c0_1 = arith.constant 0 : index
    %0 = vector.load %arg1[%c0, %c0_0, %c0_1] : memref<1x16x16xbf16, #tpu.memory_space<vmem>>, vector<1x16x16xbf16>
    %1 = vector.shape_cast %0 : vector<1x16x16xbf16> to vector<16x16xbf16>
    %c0_2 = arith.constant 0 : index
    %c0_3 = arith.constant 0 : index
    %c0_4 = arith.constant 0 : index
    %2 = vector.load %arg2[%c0_2, %c0_3, %c0_4] : memref<1x16x32xbf16, #tpu.memory_space<vmem>>, vector<1x16x32xbf16>
    %3 = vector.shape_cast %2 : vector<1x16x32xbf16> to vector<16x32xbf16>
    %c0_5 = arith.constant 0 : index
    %c0_6 = arith.constant 0 : index
    %4 = vector.load %arg3[%c0_5, %c0_6] : memref<32x64xbf16, #tpu.memory_space<vmem>>, vector<32x64xbf16>
    %cst = arith.constant dense<0.000000e+00> : vector<16x32xf32>
    %5 = tpu.matmul %1, %3, %cst {dimension_numbers = #tpu.dot_dimension_numbers<[1], [0], [0], [1], [0, 0, 1, 1], [], []>} : vector<16x16xbf16>, vector<16x32xbf16>, vector<16x32xf32> -> vector<16x32xf32>
    %6 = arith.truncf %5 : vector<16x32xf32> to vector<16x32xbf16>
    %cst_7 = arith.constant dense<0.000000e+00> : vector<16x64xf32>
    %7 = tpu.matmul %6, %4, %cst_7 {dimension_numbers = #tpu.dot_dimension_numbers<[1], [0], [0], [1], [0, 0, 1, 1], [], []>} : vector<16x32xbf16>, vector<32x64xbf16>, vector<16x64xf32> -> vector<16x64xf32>
    %cst_8 = arith.constant 0.000000e+00 : f32
    %8 = vector.broadcast %cst_8 : f32 to vector<16x64xf32>
    %9 = arith.maximumf %7, %8 : vector<16x64xf32>
    %c0_9 = arith.constant 0 : index
    %c0_10 = arith.constant 0 : index
    %10 = vector.load %arg4[%c0_9, %c0_10] : memref<64x8xbf16, #tpu.memory_space<vmem>>, vector<64x8xbf16>
    %11 = arith.truncf %9 : vector<16x64xf32> to vector<16x64xbf16>
    %cst_11 = arith.constant dense<0.000000e+00> : vector<16x8xf32>
    %12 = tpu.matmul %11, %10, %cst_11 {dimension_numbers = #tpu.dot_dimension_numbers<[1], [0], [0], [1], [0, 0, 1, 1], [], []>} : vector<16x64xbf16>, vector<64x8xbf16>, vector<16x8xf32> -> vector<16x8xf32>
    %13 = arith.truncf %12 : vector<16x8xf32> to vector<16x8xbf16>
    %cst_12 = arith.constant dense<0.000000e+00> : vector<16x8xf32>
    %14 = tpu.matmul %1, %13, %cst_12 {dimension_numbers = #tpu.dot_dimension_numbers<[1], [0], [0], [1], [0, 0, 1, 1], [], []>} : vector<16x16xbf16>, vector<16x8xbf16>, vector<16x8xf32> -> vector<16x8xf32>
    %cst_13 = arith.constant dense<0xFF800000> : vector<16xf32>
    %15 = vector.multi_reduction <maximumf>, %14, %cst_13 [1] : vector<16x8xf32> to vector<16xf32>
    %16 = vector.shape_cast %15 : vector<16xf32> to vector<16x1xf32>
    %17 = vector.broadcast %16 : vector<16x1xf32> to vector<16x8xf32>
    %18 = arith.subf %14, %17 : vector<16x8xf32>
    %19 = math.exp %18 : vector<16x8xf32>
    %cst_14 = arith.constant dense<0.000000e+00> : vector<16xf32>
    %20 = vector.multi_reduction <add>, %19, %cst_14 [1] : vector<16x8xf32> to vector<16xf32>
    %21 = vector.shape_cast %20 : vector<16xf32> to vector<16x1xf32>
    %22 = math.log %21 : vector<16x1xf32>
    %23 = vector.broadcast %22 : vector<16x1xf32> to vector<16x8xf32>
    %24 = arith.subf %18, %23 : vector<16x8xf32>
    %c0_15 = arith.constant 0 : index
    %c0_16 = arith.constant 0 : index
    %c0_17 = arith.constant 0 : index
    %25 = vector.load %arg5[%c0_15, %c0_16, %c0_17] : memref<1x16x8xf32, #tpu.memory_space<vmem>>, vector<1x16x8xf32>
    %26 = vector.shape_cast %25 : vector<1x16x8xf32> to vector<16x8xf32>
    %27 = vector.shape_cast %24 : vector<16x8xf32> to vector<1x16x8xf32>
    tpu.vector_store %arg5[%c0_15, %c0_16, %c0_17], %27 {strides = array<i32>} : memref<1x16x8xf32, #tpu.memory_space<vmem>>, vector<1x16x8xf32>,
    return
  }
  func.func @transform_0(%arg0: i32) -> (i32, i32, i32) {
    %c0_i32 = arith.constant 0 : i32
    %c0_i32_0 = arith.constant 0 : i32
    %c0_i32_1 = arith.constant 0 : i32
    return %arg0, %c0_i32, %c0_i32_0 : i32, i32, i32
  }
  func.func @transform_1(%arg0: i32) -> (i32, i32, i32) {
    %c0_i32 = arith.constant 0 : i32
    %c0_i32_0 = arith.constant 0 : i32
    %c0_i32_1 = arith.constant 0 : i32
    return %arg0, %c0_i32, %c0_i32_0 : i32, i32, i32
  }
  func.func @transform_2(%arg0: i32) -> (i32, i32) {
    %c0_i32 = arith.constant 0 : i32
    %c0_i32_0 = arith.constant 0 : i32
    %c0_i32_1 = arith.constant 0 : i32
    return %c0_i32, %c0_i32_0 : i32, i32
  }
  func.func @transform_3(%arg0: i32) -> (i32, i32) {
    %c0_i32 = arith.constant 0 : i32
    %c0_i32_0 = arith.constant 0 : i32
    %c0_i32_1 = arith.constant 0 : i32
    return %c0_i32, %c0_i32_0 : i32, i32
  }
  func.func @transform_4(%arg0: i32) -> (i32, i32, i32) {
    %c0_i32 = arith.constant 0 : i32
    %c0_i32_0 = arith.constant 0 : i32
    %c0_i32_1 = arith.constant 0 : i32
    return %arg0, %c0_i32, %c0_i32_0 : i32, i32, i32
  }
}

</mosaic_0001>

<bundles_post_ra>
// kernel: tpu_custom_call.1
= control target key start
LH: loop header
LB: loop body
LE: loop exit
PB: predicated region body
PF: predicated region fallthrough
CT: control target
= control target key end

     0   :  { %9 = vsyncpa [#allocation3], 0  ;;  %s918_s0 = inlined_call_operand.hbm [shape: bf16[8,16,16], index: 0, kind: input, shape index: {}]   ;;  %s919_s1 = inlined_call_operand.hbm [shape: bf16[8,16,32], index: 1, kind: input, shape index: {}]   ;;  %s920_s2 = inlined_call_operand.vmem [shape: bf16[32,64], index: 2, kind: input, shape index: {}]   ;;  %s921_s3 = inlined_call_operand.vmem [shape: bf16[64,8], index: 3, kind: input, shape index: {}]   ;;  %s922_s4 = inlined_call_operand.vmem [shape: f32[8,16,8], index: 4, kind: output, shape index: {}]  }
   0x1   :  { %11 = vsyncpa [#allocation3 + $0x1], 0 }
   0x2   :  { %12 = vsyncpa [#allocation5], 0 }
   0x3   :  { %14 = vsyncpa [#allocation5 + $0x1], 0  ;;  %s760_s15 = smov 0   ;;  %s762_s16 = smov 0  }
   0x4   :  { %s764_s17 = smov 0   ;;  %s766_s18 = smov 0  }
   0x5 LB: > { %s779_s19 = sadd.s32 4294967295, %s731_s18   ;;  %s782_s20 = sadd.s32 1, %s731_s18   ;;  %s731_s18 = sphi %s766_s18, %s930_s18   ;;  %s727_s17 = sphi %s764_s17, %s929_s17   ;;  %s723_s16 = sphi %s762_s16, %s928_s16   ;;  %s719_s15 = sphi %s760_s15, %s927_s15  }
   0x6   : > { %s24_s21 = ssub.s32 %s731_s18, %s782_s20  ;;  %s27_s22 = sadd.s32 1, %s727_s17 }
   0x7   : > { %p25_p0 = scmp.eq.s32.totalorder %s24_s21, 0  ;;  %p34_p1 = scmp.ne.s32.totalorder %s727_s17, %s723_s16 }
   0x8   : > { %p35_p2 = scmp.eq.s32.totalorder %s731_s18, 0  ;;  %p40_p3 = scmp.ne.s32.totalorder %s723_s16, %s719_s15 }
   0x9   : > { %s792_s23 = scalar_select %p25_p0, %s727_s17, %s27_s22  }
   0xa   : > { %p794_p4 = por %p35_p2, %p34_p1  ;;  %p41_p5 = scmp.eq.s32.totalorder %s779_s19, 0 }
   0xb   : > { %p590_p6 = scmp.lt.s32.totalorder %s731_s18, 8  ;;  %s805_s26 = sand.u32 1, %s727_s17  }
   0xc   : > { %p800_p7 = por %p41_p5, %p40_p3  ;;  %s519_s27 = sshll.u32 %s805_s26, 3 }
   0xd   : > { %s568_s28 = sshll.u32 %s731_s18, 3  ;;  %s168_s6 = scalar_lea.vmem [#allocation2], %s519_s27 }
   0xe   : > { %s173_s5 = scalar_lea.hbm %s918_s0, %s568_s28  ;;  %s176_s7 = sshll.u32 %s168_s6, 4  ;;  %s177_s7 = int_to_ptr.vmem [resolvable:$true] %s176_s7 }
   0xf   : > { %s174_s8 = sshll.u32 %s173_s5, 4  ;;  %p818_p8 = pnand %p590_p6, %p794_p4  ;;  %s175_s8 = int_to_ptr.hbm [resolvable:$true] %s174_s8 }
  0x10   : > { %p525_p9 = scmp.ge.s32.totalorder %s731_s18, 1  ;;  %s165_s10 = scalar_lea.sflag [#allocation3], %s805_s26 }
  0x11   : > { %s633_s11 = sshra.s32 %s175_s8, 4  ;;  %p637_p11 = pneg %p818_p8  ;;  %s634_s11 = int_to_ptr.hbm [resolvable:$true] %s633_s11 }
  0x12   : > { %s635_s12 = scalar_lea.hbm %s634_s11, 8  ;;  %s640_s15 = scalar_lea.hbm %s918_s0, 64 }
  0x13   : > { %p636_p10 = scmp.ne.s32.totalorder %s634_s11, %s635_s12  ;;  %p641_p0 = scmp.lt.s32.totalorder %s634_s11, %s918_s0 }
  0x14   : > { %p642_p1 = scmp.lt.s32.totalorder %s640_s15, %s635_s12 }
  0x15   : > { %p638_p12 = pnand %p637_p11, %p636_p10 }
  0x16   : > { %p643_p2 = por %p642_p1, %p641_p0 }
  0x17   : > { %p639_p13 = pneg %p638_p12 }
  0x19   : > { %p644_p3 = pnand %p643_p2, %p639_p13 }
  0x1b   : > { %647 = shalt.err (!%p644_p3)
}
  0x1c   : > { %s733_s24 = smov 64   ;;  %s734_s29 = smov 4  }
  0x1d   : > { %586 = dma.hbm_to_vmem [thread:$0]  (!%p818_p8), %s175_s8, 128, %s177_s7, %s165_s10, %s733_s24, %s733_s24, %s734_s29  }
  0x1e   : > { %p206_p4 = scmp.lt.s32.totalorder %s731_s18, 9  ;;  %s195_s6 = scalar_lea.hbm %s919_s1, %s568_s28 }
  0x1f   : > { %s196_s12 = sshll.u32 %s195_s6, 4  ;;  %s190_s13 = scalar_lea.vmem [#allocation4], %s519_s27  ;;  %s197_s12 = int_to_ptr.hbm [resolvable:$true] %s196_s12 }
  0x20   : > { %p845_p5 = pnand %p525_p9, %p206_p4  ;;  %s198_s14 = sshll.u32 %s190_s13, 4  ;;  %s199_s14 = int_to_ptr.vmem [resolvable:$true] %s198_s14 }
  0x21   : > { %s187_s15 = scalar_lea.sflag [#allocation5], %s805_s26  ;;  %s663_s21 = sshra.s32 %s197_s12, 4  ;;  %s664_s21 = int_to_ptr.hbm [resolvable:$true] %s663_s21 }
  0x22   : > { %s665_s7 = scalar_lea.hbm %s664_s21, 8  ;;  %s670_s8 = scalar_lea.hbm %s919_s1, 64 }
  0x23   : > { %p666_p6 = scmp.ne.s32.totalorder %s664_s21, %s665_s7  ;;  %p671_p9 = scmp.lt.s32.totalorder %s664_s21, %s919_s1 }
  0x24   : > { %p672_p13 = scmp.lt.s32.totalorder %s670_s8, %s665_s7 }
  0x25   : > { %p668_p10 = pnand %p666_p6, %p637_p11 }
  0x26   : > { %p673_p0 = por %p672_p13, %p671_p9 }
  0x27   : > { %p669_p12 = pneg %p668_p10 }
  0x29   : > { %p674_p1 = pnand %p673_p0, %p669_p12 }
  0x2b   : > { %677 = shalt.err (!%p674_p1)
}
  0x2c   : > { %589 = dma.hbm_to_vmem [thread:$0]  (!%p818_p8), %s197_s12, 128, %s199_s14, %s187_s15, %s733_s24, %s733_s24, %s734_s29  }
  0x2d   : > { %210 = sbr.rel (%p845_p5) target bundleno = 873 (0x369), region = 36  ;;  %s212_s26 = sand.u32 (!%p845_p5), 1, %s723_s16  }
  0x2e   : > { %s526_s27 = sshll.u32 (!%p845_p5), %s212_s26, 3  ;;  %s213_s30 = scalar_lea.sflag (!%p845_p5), [#allocation3], %s212_s26 }
  0x2f   : > { %s216_s5 = scalar_lea.vmem (!%p845_p5), [#allocation2], %s526_s27 }
  0x32   : > { %710 = dma.done.wait (%p800_p7), %s213_s30, 128  }
  0x33   : > { %712 = vsyncadd (%p800_p7), %s213_s30, 4294967168  ;;  %s223_s6 = scalar_lea.sflag [#allocation5], %s212_s26  ;;  %s226_s13 = scalar_lea.vmem [#allocation4], %s526_s27 }
  0x34   : > { %714 = dma.done.wait (%p800_p7), %s223_s6, 128  }
  0x35   : > { %716 = vsyncadd (%p800_p7), %s223_s6, 4294967168  ;;  %v572_v0 = vld [vmem:[%s226_s13] sm:$0xff]  ;;  %v571_v1 = vld [vmem:[%s216_s5] sm:$0xff]  ;;  %vm282_vm0 = vcmask 130048   ;;  %vm313_vm1 = vcmask 261120   ;;  %vm366_vm2 = vcmask 523264  }
  0x36   : > { %293 = vmatpush.bf16.msra.mxu0 %v572_v0  ;;  %v574_v2 = vld [vmem:[%s920_s2 + $0x8] sm:$0xff]  ;;  %v573_v3 = vld [vmem:[%s920_s2] sm:$0xff]  ;;  %v578_v4 = vld [vmem:[%s921_s3 + $0x18] sm:$0xff]  ;;  %vm399_vm3 = vcmask 64512   ;;  %p257_p7 = scmp.lt.s32.totalorder %s779_s19, 7 }
  0x37   : > { %323 = vmatpush.bf16.msra.mxu1 %v574_v2  ;;  %374 = vmatpush.bf16.msra.mxu2 %v578_v4  ;;  %v577_v8 = vld [vmem:[%s921_s3 + $0x10] sm:$0xff]  ;;  %v576_v9 = vld [vmem:[%s921_s3 + $0x8] sm:$0xff]  ;;  %v575_v10 = vld [vmem:[%s921_s3] sm:$0xff] }
  0x38   : > { %s932_s19 = smov (!%p257_p7, %s779_s19), 7 }
  0x39   : > { %538 = vmatmul.msk.bf16.vlgmr.msra.gmra.mxu0 %vm282_vm0, %v571_v1  ;;  %s570_s8 = sshll.u32 %s932_s19, 4 }
  0x3a   : > { %s261_s26 = scalar_lea.vmem %s922_s4, %s570_s8 }
  0x3b   : > { %324 = vmatpush.bf16.msra.mxu1 %v573_v3  ;;  %375 = vmatpush.bf16.msra.mxu2 %v577_v8 }
  0x3f   : > { %376 = vmatpush.bf16.msra.mxu2 %v576_v9 }
  0x43   : > { %377 = vmatpush.bf16.msra.mxu2 %v575_v10 }
  0xb6   : > { %v295_v5 = vpop.f32.mrf.mxu0 }
  0xbe   : > { %v297_v6 = vpop.f32.mrf.mxu0 }
  0xbf   : > { %v300_v7 = vpack.c.bf16 %v297_v6, %v295_v5 }
  0xc1   : > { %547 = vmatmul.msk.bf16.vlgmr.msra.gmra.mxu1 %vm313_vm1, %v300_v7 }
 0x13e   : > { %v326_v11 = vpop.f32.mrf.mxu1 }
 0x13f   : > { %v331_v13 = vmax.f32 %v326_v11, 0.0 }
 0x146   : > { %v328_v12 = vpop.f32.mrf.mxu1 }
 0x147   : > { %v332_v14 = vmax.f32 %v328_v12, 0.0 }
 0x149   : > { %v341_v15 = vpack.c.bf16 %v332_v14, %v331_v13 }
 0x14b   : > { %564 = vmatmul.msk.bf16.vlgmr.msra.gmra.mxu2 %vm366_vm2, %v341_v15 }
 0x1ce   : > { %v379_v16 = vpop.f32.mrf.mxu2 }
 0x1d6   : > { %v381_v17 = vpop.f32.mrf.mxu2 }
 0x1d7   : > { %v384_v18 = vpack.c.bf16 %v381_v17, %v379_v16 }
 0x1d9   : > { %392 = vmatpush.bf16.msra.mxu3 %v384_v18 }
 0x1dc   : > { %565 = vmatmul.msk.bf16.vlgmr.msra.gmra.mxu3 %vm282_vm0, %v571_v1 }
 0x25f   : > { %v394_v19 = vpop.f32.mrf.mxu3 }
 0x260   : > { %v400_v20 = vsel %vm399_vm3, %v394_v19, -inf }
 0x261   : > { %401 = vmax.xlane.f32.xlu0 %v400_v20 }
 0x267   : > { %v396_v21 = vpop.f32.mrf.mxu3 }
 0x268   : > { %v403_v22 = vsel %vm399_vm3, %v396_v21, -inf }
 0x269   : > { %404 = vmax.xlane.f32.xlu0 %v403_v22 }
 0x2d4   : > { %v402_v23 = vpop.xlane.xlu0 %401 }
 0x2d5   : > { %v406_v24 = vsub.f32 %v394_v19, %v402_v23 }
 0x2d7   : > { %v408_v25 = vmul.f32 1.442695, %v406_v24 }
 0x2d9   : > { %625 = vpow2.f32 %v408_v25 }
 0x2dc   : > { %v405_v26 = vpop.xlane.xlu0 %404 }
 0x2dd   : > { %v407_v27 = vsub.f32 %v396_v21, %v405_v26 }
 0x2df   : > { %v626_v28 = vpop.eup %625  ;;  %v410_v29 = vmul.f32 1.442695, %v407_v27 }
 0x2e0   : > { %v412_v30 = vsel %vm399_vm3, %v626_v28, 0.0 }
 0x2e1   : > { %627 = vpow2.f32 %v410_v29  ;;  %413 = vadd.xlane.f32.xlu1 %v412_v30 }
 0x2e7   : > { %v628_v31 = vpop.eup %627 }
 0x2e8   : > { %v415_v32 = vsel %vm399_vm3, %v628_v31, 0.0 }
 0x2e9   : > { %416 = vadd.xlane.f32.xlu1 %v415_v32 }
 0x354   : > { %v414_v33 = vpop.xlane.xlu1 %413 }
 0x355   : > { %629 = vlog2.f32 %v414_v33 }
 0x35b   : > { %v630_v34 = vpop.eup %629 }
 0x35c   : > { %v419_v35 = vmul.f32 0.6931472, %v630_v34  ;;  %v417_v36 = vpop.xlane.xlu1 %416 }
 0x35d   : > { %631 = vlog2.f32 %v417_v36 }
 0x35e   : > { %v422_v37 = vsub.f32 %v406_v24, %v419_v35 }
 0x360   : > { %424 = vst.msk [vmem:[%s261_s26] sm:$0xff] %vm399_vm3, %v422_v37 }
 0x363   : > { %v632_v38 = vpop.eup %631 }
 0x364   : > { %v421_v39 = vmul.f32 0.6931472, %v632_v38 }
 0x366   : > { %v423_v40 = vsub.f32 %v407_v27, %v421_v39 }
 0x368   : > { %425 = vst.msk [vmem:[%s261_s26 + $0x8] sm:$0xff] %vm399_vm3, %v423_v40 }
 0x369 PF: > { %p17_p8 = scmp.ge.s32.totalorder %s782_s20, 10   ;;  %s927_s15 = smov %s723_s16 }
 0x36a   : > { %s928_s16 = smov %s727_s17  ;;  %s929_s17 = smov %s792_s23 }
 0x36b   : > { %s930_s18 = smov %s782_s20  ;;  %19 = sbr.rel (!%p17_p8) target bundleno = 5 (0x5), region = 89 }
 0x370   :  { %447 = vsyncpa [#allocation3], 1 }
 0x371   :  { %449 = vsyncpa [#allocation3 + $0x1], 1 }
 0x372   :  { %450 = vsyncpa [#allocation5], 1 }
 0x373   :  { %452 = vsyncpa [#allocation5 + $0x1], 1 }

</bundles_post_ra>
